<compile_context>
chip_gen: v7x
topology: tpu7x:2x2x1
jax: 0.10.0
libtpu: 0.0.40
codegen_flags: <defaults>
</compile_context>

<pallas_src>
import functools

import jax
import jax.numpy as jnp
from jax.experimental import pallas as pl
from jax.experimental.pallas import tpu as pltpu

# ----------------------------- sizes (small) ---------------------------------
B = 2            # batch
S = 8            # text sequence length
H_TXT = 32       # stand-in for bert hidden_size (768)
C_IMG = 4        # image channels
HW = 16          # image spatial size
SPATIAL = HW * HW
IMG_FEAT = 64    # stand-in for inception 2048-dim feature
NUM_CLASSES = 15

B_PAD = 8        # sublane-aligned output batch (f32 sublanes = 8)
C_PAD = 128      # lane-dense padded class dim


def _is_v5():
    """v5e has the lowest HBM BW -> keep the in-kernel spatial mean there."""
    try:
        return "v5" in jax.devices()[0].device_kind.lower()
    except Exception:
        return False


# ------------------------------- kernels --------------------------------------
def _kernel_folded(txt_ref, img_ref, wp_ref, bp_ref, wt_ref, wimg_ref, b_ref,
                   out_ref):
    """v6e/v7x path: spatial mean folded into one (B,1024)@(1024,128) matmul.

    txt_ref : (B, S, H_TXT)          f32   full token embeddings (CLS read here)
    img_ref : (B, C_IMG*SPATIAL)     bf16  flattened NCHW image
    wp_ref  : (H_TXT, H_TXT)         bf16  text pooler weight
    bp_ref  : (1, H_TXT)             f32   text pooler bias
    wt_ref  : (H_TXT, C_PAD)         bf16  fc weight, text part (class-padded)
    wimg_ref: (C_IMG*SPATIAL, C_PAD) bf16  repeat(wproj@wfc_i, SPATIAL)/SPATIAL
    b_ref   : (1, C_PAD)             f32   fused bias (bfc + bproj @ wfc_i)
    out_ref : (B_PAD, C_PAD)         f32   rows >= B are don't-care
    """
    bf16 = jnp.bfloat16

    # ---- text branch: BERT-style pooler on the in-kernel-indexed [CLS] token.
    cls_tok = txt_ref[:, 0, :]                                   # (B, H_TXT)
    pooled = jnp.tanh(
        jnp.dot(cls_tok.astype(bf16), wp_ref[...],
                preferred_element_type=jnp.float32)
        + bp_ref[...]
    )                                                            # (B, H_TXT) f32

    # ---- fusion head: image projection AND spatial mean pre-folded into wimg.
    logits = (
        jnp.dot(pooled.astype(bf16), wt_ref[...],
                preferred_element_type=jnp.float32)
        + jnp.dot(img_ref[...], wimg_ref[...],
                  preferred_element_type=jnp.float32)
        + b_ref[...]
    )                                                            # (B, C_PAD) f32

    # Lane-dense padded slab; sublane-partial store of the B valid rows.
    out_ref[0:B, :] = logits


def _kernel_mean(txt_ref, img_ref, wp_ref, bp_ref, wt_ref, wi_ref, b_ref,
                 out_ref):
    """v5e path: keep the in-kernel (f32) spatial mean, image DMA'd as bf16.

    img_ref : (B, C_IMG, SPATIAL) bf16
    wi_ref  : (C_IMG, C_PAD)      bf16  (wproj @ wfc_i), class-padded
    """
    bf16 = jnp.bfloat16

    cls_tok = txt_ref[:, 0, :]                                   # (B, H_TXT)
    pooled = jnp.tanh(
        jnp.dot(cls_tok.astype(bf16), wp_ref[...],
                preferred_element_type=jnp.float32)
        + bp_ref[...]
    )

    # Lane-dense spatial reduction, accumulated in f32 (v5e VPU has no bf16).
    img_pool = jnp.mean(img_ref[...].astype(jnp.float32), axis=-1)  # (B, C_IMG)

    logits = (
        jnp.dot(pooled.astype(bf16), wt_ref[...],
                preferred_element_type=jnp.float32)
        + jnp.dot(img_pool.astype(bf16), wi_ref[...],
                  preferred_element_type=jnp.float32)
        + b_ref[...]
    )
    out_ref[0:B, :] = logits


# --------------------------- one-time parameter prep --------------------------
def prepare_params(params, *, fold_spatial_mean):
    """One-time fold/pad/cast of weights; NOT on the per-forward-call path.

    Folds the purely-linear image projection into the classifier:
      cat(pooled, img_pool @ wproj + bproj) @ [wfc_t; wfc_i] + bfc
        == pooled @ wfc_t + img_pool @ (wproj @ wfc_i) + (bproj @ wfc_i + bfc)
    and (optionally) folds the spatial mean into the image weight.
    """
    f32, bf16 = jnp.float32, jnp.bfloat16
    pad_c = C_PAD - NUM_CLASSES

    w_img = params["wproj"] @ params["wfc_i"]                    # (C_IMG, NC) f32
    b_all = params["bfc"] + params["bproj"] @ params["wfc_i"]    # (NC,)       f32
    w_img_p = jnp.pad(w_img, ((0, 0), (0, pad_c)))               # (C_IMG, C_PAD)

    if fold_spatial_mean:
        # Divide in f32 BEFORE the bf16 cast (precision), then cast once.
        w_img_p = jnp.repeat(w_img_p, SPATIAL, axis=0) / float(SPATIAL)

    prepared = {
        "wp":   params["wp"].astype(bf16),                              # (H,H)
        "bp":   params["bp"].reshape(1, H_TXT).astype(f32),             # (1,H)
        "wt":   jnp.pad(params["wfc_t"],
                        ((0, 0), (0, pad_c))).astype(bf16),             # (H,128)
        "wimg": w_img_p.astype(bf16),              # (1024,128) or (C_IMG,128)
        "b":    jnp.pad(b_all, ((0, pad_c),)).reshape(1, C_PAD).astype(f32),
    }
    return jax.tree_util.tree_map(jax.block_until_ready, prepared)


# ------------------------------- forward wrapper -------------------------------
@functools.partial(jax.jit, static_argnames=("fold_spatial_mean",))
def multimodal_classifier(text_emb, image_nchw, prepared, *,
                          fold_spatial_mean=True):
    """text_emb: (B, S, H_TXT) f32; image_nchw: (B, C_IMG, HW, HW) f32."""
    bf16 = jnp.bfloat16

    if fold_spatial_mean:
        # Free contiguous reshape + single bf16 cast (halves the image DMA).
        img = image_nchw.reshape(B, C_IMG * SPATIAL).astype(bf16)
        kernel = _kernel_folded
        img_flops = 2 * B * (C_IMG * SPATIAL) * C_PAD
    else:
        img = image_nchw.reshape(B, C_IMG, SPATIAL).astype(bf16)
        kernel = _kernel_mean
        img_flops = B * C_IMG * SPATIAL + 2 * B * C_IMG * C_PAD

    args = (text_emb, img, prepared["wp"], prepared["bp"],
            prepared["wt"], prepared["wimg"], prepared["b"])

    def full_spec(a):
        nd = a.ndim
        return pl.BlockSpec(a.shape, lambda *_, nd=nd: (0,) * nd)

    flops = 2 * B * H_TXT * H_TXT + 2 * B * H_TXT * C_PAD + img_flops
    bytes_accessed = sum(int(a.size) * a.dtype.itemsize for a in args) + (
        B_PAD * C_PAD * 4
    )

    out_padded = pl.pallas_call(
        kernel,
        out_shape=jax.ShapeDtypeStruct((B_PAD, C_PAD), jnp.float32),
        grid=(1,),
        in_specs=[full_spec(a) for a in args],
        out_specs=pl.BlockSpec((B_PAD, C_PAD), lambda *_: (0, 0)),
        compiler_params=pltpu.CompilerParams(
            dimension_semantics=("arbitrary",)
        ),
        cost_estimate=pl.CostEstimate(
            flops=flops,
            transcendentals=B * H_TXT,
            bytes_accessed=bytes_accessed,
        ),
    )(*args)

    # Rows >= B and lanes >= NUM_CLASSES of the padded slab are don't-care.
    return out_padded[:B, :NUM_CLASSES]


# ------------------------------ reference -------------------------------------
def reference(text_emb, image_nchw, params):
    """Pure-f32 reference matching the original module's forward (w/ stand-ins)."""
    cls_tok = text_emb[:, 0, :]
    pooled = jnp.tanh(cls_tok @ params["wp"] + params["bp"])
    img_pool = jnp.mean(image_nchw, axis=(2, 3))           # NCHW global avg pool
    img_feat = img_pool @ params["wproj"] + params["bproj"]
    combined = jnp.concatenate([pooled, img_feat], axis=1)
    w_fc = jnp.concatenate([params["wfc_t"], params["wfc_i"]], axis=0)
    return combined @ w_fc + params["bfc"]


# -------------------------------- main ----------------------------------------
if __name__ == "__main__":
    key = jax.random.PRNGKey(0)
    k_txt, k_img, k1, k2, k3, k4, k5, k6, k7 = jax.random.split(key, 9)

    text_emb = jax.random.normal(k_txt, (B, S, H_TXT), dtype=jnp.float32)
    image_nchw = jax.random.normal(k_img, (B, C_IMG, HW, HW), dtype=jnp.float32)

    params = {
        "wp":    0.05 * jax.random.normal(k1, (H_TXT, H_TXT), dtype=jnp.float32),
        "bp":    0.01 * jax.random.normal(k2, (H_TXT,), dtype=jnp.float32),
        "wproj": 0.05 * jax.random.normal(k3, (C_IMG, IMG_FEAT), dtype=jnp.float32),
        "bproj": 0.01 * jax.random.normal(k4, (IMG_FEAT,), dtype=jnp.float32),
        "wfc_t": 0.05 * jax.random.normal(k5, (H_TXT, NUM_CLASSES), dtype=jnp.float32),
        "wfc_i": 0.05 * jax.random.normal(k6, (IMG_FEAT, NUM_CLASSES), dtype=jnp.float32),
        "bfc":   0.01 * jax.random.normal(k7, (NUM_CLASSES,), dtype=jnp.float32),
    }

    ref = reference(text_emb, image_nchw, params)

    # Generation-aware default: fold the spatial mean into the MXU on v6e/v7x,
    # keep the in-kernel mean (+ halved bf16 image DMA) on v5e.  Validate both.
    default_fold = not _is_v5()
    for fold in (default_fold, not default_fold):
        prepared = prepare_params(params, fold_spatial_mean=fold)   # one-time
        out = multimodal_classifier(text_emb, image_nchw, prepared,
                                    fold_spatial_mean=fold)
        out = jax.block_until_ready(out)
        assert out.shape == (B, NUM_CLASSES)
        # bf16 MXU operands (f32 accumulation) vs the pure-f32 reference.
        assert jnp.allclose(out, ref, atol=1e-2, rtol=1e-2), (
            f"mismatch vs reference (fold_spatial_mean={fold})")

    print("KERNEL_OK")
</pallas_src>

<mosaic_0001>
module attributes {stable_mosaic.version = 11 : i64} {
  func.func @_kernel_folded(%arg0: i32, %arg1: memref<2x8x32xf32, #tpu.memory_space<vmem>>, %arg2: memref<2x1024xbf16, #tpu.memory_space<vmem>>, %arg3: memref<32x32xbf16, #tpu.memory_space<vmem>>, %arg4: memref<1x32xf32, #tpu.memory_space<vmem>>, %arg5: memref<32x128xbf16, #tpu.memory_space<vmem>>, %arg6: memref<1024x128xbf16, #tpu.memory_space<vmem>>, %arg7: memref<1x128xf32, #tpu.memory_space<vmem>>, %arg8: memref<8x128xf32, #tpu.memory_space<vmem>>) attributes {dimension_semantics = [#tpu.dimension_semantics<arbitrary>], iteration_bounds = array<i64: 1>, scalar_prefetch = 0 : i64, scratch_operands = 0 : i64, tpu.core_type = #tpu.core_type<tc>, window_params = [{pipeline_mode = #tpu.pipeline_mode<synchronous>, transform_indices = @transform_0, window_bounds = array<i64: 2, 8, 32>}, {pipeline_mode = #tpu.pipeline_mode<synchronous>, transform_indices = @transform_1, window_bounds = array<i64: 2, 1024>}, {pipeline_mode = #tpu.pipeline_mode<synchronous>, transform_indices = @transform_2, window_bounds = array<i64: 32, 32>}, {pipeline_mode = #tpu.pipeline_mode<synchronous>, transform_indices = @transform_3, window_bounds = array<i64: 1, 32>}, {pipeline_mode = #tpu.pipeline_mode<synchronous>, transform_indices = @transform_4, window_bounds = array<i64: 32, 128>}, {pipeline_mode = #tpu.pipeline_mode<synchronous>, transform_indices = @transform_5, window_bounds = array<i64: 1024, 128>}, {pipeline_mode = #tpu.pipeline_mode<synchronous>, transform_indices = @transform_6, window_bounds = array<i64: 1, 128>}, {pipeline_mode = #tpu.pipeline_mode<synchronous>, transform_indices = @transform_7, window_bounds = array<i64: 8, 128>}]} {
    %c0 = arith.constant 0 : index
    %c0_0 = arith.constant 0 : index
    %c0_1 = arith.constant 0 : index
    %0 = vector.load %arg1[%c0, %c0_0, %c0_1] : memref<2x8x32xf32, #tpu.memory_space<vmem>>, vector<2x1x32xf32>
    %1 = vector.shape_cast %0 : vector<2x1x32xf32> to vector<2x32xf32>
    %2 = arith.truncf %1 : vector<2x32xf32> to vector<2x32xbf16>
    %c0_2 = arith.constant 0 : index
    %c0_3 = arith.constant 0 : index
    %3 = vector.load %arg3[%c0_2, %c0_3] : memref<32x32xbf16, #tpu.memory_space<vmem>>, vector<32x32xbf16>
    %cst = arith.constant dense<0.000000e+00> : vector<2x32xf32>
    %4 = tpu.matmul %2, %3, %cst {dimension_numbers = #tpu.dot_dimension_numbers<[1], [0], [0], [1], [0, 0, 1, 1], [], []>} : vector<2x32xbf16>, vector<32x32xbf16>, vector<2x32xf32> -> vector<2x32xf32>
    %c0_4 = arith.constant 0 : index
    %c0_5 = arith.constant 0 : index
    %5 = vector.load %arg4[%c0_4, %c0_5] : memref<1x32xf32, #tpu.memory_space<vmem>>, vector<1x32xf32>
    %6 = vector.broadcast %5 : vector<1x32xf32> to vector<2x32xf32>
    %7 = arith.addf %4, %6 : vector<2x32xf32>
    %8 = math.tanh %7 : vector<2x32xf32>
    %9 = arith.truncf %8 : vector<2x32xf32> to vector<2x32xbf16>
    %c0_6 = arith.constant 0 : index
    %c0_7 = arith.constant 0 : index
    %10 = vector.load %arg5[%c0_6, %c0_7] : memref<32x128xbf16, #tpu.memory_space<vmem>>, vector<32x128xbf16>
    %cst_8 = arith.constant dense<0.000000e+00> : vector<2x128xf32>
    %11 = tpu.matmul %9, %10, %cst_8 {dimension_numbers = #tpu.dot_dimension_numbers<[1], [0], [0], [1], [0, 0, 1, 1], [], []>} : vector<2x32xbf16>, vector<32x128xbf16>, vector<2x128xf32> -> vector<2x128xf32>
    %c0_9 = arith.constant 0 : index
    %c0_10 = arith.constant 0 : index
    %12 = vector.load %arg2[%c0_9, %c0_10] : memref<2x1024xbf16, #tpu.memory_space<vmem>>, vector<2x1024xbf16>
    %c0_11 = arith.constant 0 : index
    %c0_12 = arith.constant 0 : index
    %13 = vector.load %arg6[%c0_11, %c0_12] : memref<1024x128xbf16, #tpu.memory_space<vmem>>, vector<1024x128xbf16>
    %cst_13 = arith.constant dense<0.000000e+00> : vector<2x128xf32>
    %14 = tpu.matmul %12, %13, %cst_13 {dimension_numbers = #tpu.dot_dimension_numbers<[1], [0], [0], [1], [0, 0, 1, 1], [], []>} : vector<2x1024xbf16>, vector<1024x128xbf16>, vector<2x128xf32> -> vector<2x128xf32>
    %15 = arith.addf %11, %14 : vector<2x128xf32>
    %c0_14 = arith.constant 0 : index
    %c0_15 = arith.constant 0 : index
    %16 = vector.load %arg7[%c0_14, %c0_15] : memref<1x128xf32, #tpu.memory_space<vmem>>, vector<1x128xf32>
    %17 = vector.broadcast %16 : vector<1x128xf32> to vector<2x128xf32>
    %18 = arith.addf %15, %17 : vector<2x128xf32>
    %c0_16 = arith.constant 0 : index
    %c0_17 = arith.constant 0 : index
    %19 = vector.load %arg8[%c0_16, %c0_17] : memref<8x128xf32, #tpu.memory_space<vmem>>, vector<2x128xf32>
    tpu.vector_store %arg8[%c0_16, %c0_17], %18 {strides = array<i32>} : memref<8x128xf32, #tpu.memory_space<vmem>>, vector<2x128xf32>,
    return
  }
  func.func @transform_0(%arg0: i32) -> (i32, i32, i32) {
    %c0_i32 = arith.constant 0 : i32
    %c0_i32_0 = arith.constant 0 : i32
    %c0_i32_1 = arith.constant 0 : i32
    %c0_i32_2 = arith.constant 0 : i32
    return %c0_i32, %c0_i32_0, %c0_i32_1 : i32, i32, i32
  }
  func.func @transform_1(%arg0: i32) -> (i32, i32) {
    %c0_i32 = arith.constant 0 : i32
    %c0_i32_0 = arith.constant 0 : i32
    %c0_i32_1 = arith.constant 0 : i32
    return %c0_i32, %c0_i32_0 : i32, i32
  }
  func.func @transform_2(%arg0: i32) -> (i32, i32) {
    %c0_i32 = arith.constant 0 : i32
    %c0_i32_0 = arith.constant 0 : i32
    %c0_i32_1 = arith.constant 0 : i32
    return %c0_i32, %c0_i32_0 : i32, i32
  }
  func.func @transform_3(%arg0: i32) -> (i32, i32) {
    %c0_i32 = arith.constant 0 : i32
    %c0_i32_0 = arith.constant 0 : i32
    %c0_i32_1 = arith.constant 0 : i32
    return %c0_i32, %c0_i32_0 : i32, i32
  }
  func.func @transform_4(%arg0: i32) -> (i32, i32) {
    %c0_i32 = arith.constant 0 : i32
    %c0_i32_0 = arith.constant 0 : i32
    %c0_i32_1 = arith.constant 0 : i32
    return %c0_i32, %c0_i32_0 : i32, i32
  }
  func.func @transform_5(%arg0: i32) -> (i32, i32) {
    %c0_i32 = arith.constant 0 : i32
    %c0_i32_0 = arith.constant 0 : i32
    %c0_i32_1 = arith.constant 0 : i32
    return %c0_i32, %c0_i32_0 : i32, i32
  }
  func.func @transform_6(%arg0: i32) -> (i32, i32) {
    %c0_i32 = arith.constant 0 : i32
    %c0_i32_0 = arith.constant 0 : i32
    %c0_i32_1 = arith.constant 0 : i32
    return %c0_i32, %c0_i32_0 : i32, i32
  }
  func.func @transform_7(%arg0: i32) -> (i32, i32) {
    %c0_i32 = arith.constant 0 : i32
    %c0_i32_0 = arith.constant 0 : i32
    %c0_i32_1 = arith.constant 0 : i32
    return %c0_i32, %c0_i32_0 : i32, i32
  }
}

</mosaic_0001>

<bundles_post_ra>
// kernel: multimodal_classifier.1
= control target key start
LH: loop header
LB: loop body
LE: loop exit
PB: predicated region body
PF: predicated region fallthrough
CT: control target
= control target key end

     0   :  { %12 = vsyncpa [#allocation3], 0  ;;  %s1209_s24 = smov [#allocation2]   ;;  %s1320_s0 = inlined_call_operand.vmem [shape: f32[2,8,32], index: 0, kind: input, shape index: {}]   ;;  %s1321_s1 = inlined_call_operand.vmem [shape: bf16[2,1024], index: 1, kind: input, shape index: {}]   ;;  %s1322_s2 = inlined_call_operand.vmem [shape: bf16[32,32], index: 2, kind: input, shape index: {}]   ;;  %s1323_s3 = inlined_call_operand.vmem [shape: f32[1,32], index: 3, kind: input, shape index: {}]   ;;  %s1324_s4 = inlined_call_operand.vmem [shape: bf16[32,128], index: 4, kind: input, shape index: {}]   ;;  %s1325_s5 = inlined_call_operand.hbm [shape: bf16[1024,128], index: 5, kind: input, shape index: {}]   ;;  %s1326_s6 = inlined_call_operand.vmem [shape: f32[1,128], index: 6, kind: input, shape index: {}]   ;;  %s1327_s7 = inlined_call_operand.vmem [shape: f32[8,128], index: 7, kind: output, shape index: {}]  }
   0x1   :  { %s28_s25 = sshll.u32 %s1209_s24, 4  ;;  %s1185_s28 = scalar_lea.hbm %s1325_s5, 8192  ;;  %s29_s25 = int_to_ptr.vmem [resolvable:$true] %s28_s25 }
   0x2   :  { %p1186_p0 = scmp.ne.s32.totalorder %s1325_s5, %s1185_s28  ;;  %p1189_p1 = scmp.lt.u32.totalorder %s1185_s28, %s1325_s5 }
   0x4   :  { %p1191_p2 = pnand %p1189_p1, %p1186_p0 }
   0x6   :  { %1194 = shalt.err (!%p1191_p2)
}
   0x7   :  { %s1195_s10 = scalar_lea.vmem %s29_s25, 8192  ;;  %p1200_p4 = scmp.lt.s32.totalorder %s29_s25, %s29_s25 }
   0x8   :  { %p1196_p3 = scmp.ne.s32.totalorder %s29_s25, %s1195_s10  ;;  %p1201_p5 = scmp.lt.s32.totalorder %s1195_s10, %s1195_s10 }
   0xa   :  { %p1202_p6 = por %p1201_p5, %p1200_p4 }
   0xc   :  { %p1203_p7 = pnand %p1202_p6, %p1196_p3 }
   0xe   :  { %1206 = shalt.err (!%p1203_p7)
}
   0xf   :  { %s1210_s11 = smov 64   ;;  %s1211_s12 = smov 4  }
  0x10   :  { %34 = dma.hbm_to_vmem [thread:$0]  %s1325_s5, 8192, %s29_s25, [#allocation3], %s1210_s11, %s1210_s11, %s1211_s12  }
  0x11   :  { %1207 = dma.done.wait [#allocation3], 8192  }
  0x12   :  { %1208 = vsyncadd [#allocation3], 4294959104  ;;  %v1212_v0 = vmov 0.0   ;;  %vm1213_vm0 = vmmov 0   ;;  %v1114_v1 = vld [vmem:[%s1322_s2] sm:$0xff]   ;;  %v1115_v2 = vld [vmem:[%s1322_s2 + $0x8] sm:$0xff]   ;;  %v260_v34 = vlaneseq }
  0x13   :  { %1092 = vmatprep.subr.bf16.mxu0 %v1212_v0  ;;  %1096 = vmatprep.mubr.msk.bf16.mxu0 %vm1213_vm0, %v1212_v0  ;;  %v41_v3 = vld [vmem:[%s1320_s0] sm:$0x1]  ;;  %v42_v4 = vld [vmem:[%s1320_s0 + $0x8] sm:$0x1]  ;;  %vm61_vm1 = vcmask 1041409   ;;  %vm76_vm2 = vcmask 261120  }
  0x14   :  { %1093 = vmatpush3.bf16.msra.mxu0 %v1114_v1  ;;  %v43_v5 = vpack.c.bf16 %v41_v3, %v41_v3  ;;  %v44_v6 = vpack.c.bf16 %v42_v4, %v42_v4  ;;  %v1116_v7 = vld [vmem:[#allocation2 + $0x40] sm:$0xff]   ;;  %v1120_v13 = vld [vmem:[#allocation2 + $0x48] sm:$0xff]   ;;  %v1124_v19 = vld [vmem:[#allocation2 + $0x50] sm:$0xff]   ;;  %v1214_v32 = vmov 1966171168   ;;  %v261_v40 = vshrl.u32 %v260_v34, 7 }
  0x15   :  { %1094 = vmatprep.subr.bf16.mxu0 %v1212_v0  ;;  %v1117_v8 = vld [vmem:[#allocation2] sm:$0xff]   ;;  %1001 = vmatprep.subr.bf16.mxu1 %v1116_v7  ;;  %v1121_v14 = vld [vmem:[#allocation2 + $0x8] sm:$0xff]   ;;  %v1125_v20 = vld [vmem:[#allocation2 + $0x10] sm:$0xff]   ;;  %v258_v33 = vunpack.c.l.s4 %v1214_v32 }
  0x16   :  { %v58_v9 = vunpack.c.l.b16 %v43_v5  ;;  %v59_v10 = vunpack.c.l.b16 %v44_v6  ;;  %v1118_v11 = vld [vmem:[#allocation2 + $0xc0] sm:$0xff]   ;;  %1002 = vmatpush3.bf16.msra.mxu1 %v1117_v8  ;;  %v1122_v18 = vld [vmem:[#allocation2 + $0xc8] sm:$0xff]   ;;  %v1126_v22 = vld [vmem:[#allocation2 + $0xd0] sm:$0xff]  }
  0x17   :  { %v1119_v16 = vld [vmem:[#allocation2 + $0x80] sm:$0xff]   ;;  %1003 = vmatprep.subr.bf16.mxu1 %v1120_v13  ;;  %v1123_v21 = vld [vmem:[#allocation2 + $0x88] sm:$0xff]   ;;  %v1128_v23 = vld [vmem:[#allocation2 + $0x58] sm:$0xff]   ;;  %v259_v39 = vunpack.c.0.s8 %v258_v33 }
  0x18   :  { %1095 = vmatpush3.bf16.msra.mxu0 %v1115_v2  ;;  %v60_v12 = vrot.slane %v59_v10, 7  ;;  %v1129_v24 = vld [vmem:[#allocation2 + $0x18] sm:$0xff]   ;;  %v1127_v25 = vld [vmem:[#allocation2 + $0x90] sm:$0xff]   ;;  %v1132_v27 = vld [vmem:[#allocation2 + $0x60] sm:$0xff]  }
  0x19   :  { %1023 = vmatprep.subr.bf16.mxu0 %v1118_v11  ;;  %v1130_v26 = vld [vmem:[#allocation2 + $0xd8] sm:$0xff]   ;;  %v1133_v28 = vld [vmem:[#allocation2 + $0x20] sm:$0xff]   ;;  %v1136_v31 = vld [vmem:[#allocation2 + $0x68] sm:$0xff]   ;;  %v1284_v45 = vsub.s32 %v259_v39, %v261_v40 }
  0x1a   :  { %v62_v15 = vsel %vm61_vm1, %v60_v12, %v58_v9  ;;  %1004 = vmatpush3.bf16.msra.mxu1 %v1121_v14  ;;  %v1131_v29 = vld [vmem:[#allocation2 + $0x98] sm:$0xff]   ;;  %v1134_v30 = vld [vmem:[#allocation2 + $0xe0] sm:$0xff]   ;;  %v1137_v35 = vld [vmem:[#allocation2 + $0x28] sm:$0xff]  }
  0x1b   :  { %v63_v17 = vpack.c.b16 %v62_v15, %v62_v15  ;;  %1005 = vmatprep.subr.bf16.mxu1 %v1124_v19  ;;  %v1135_v36 = vld [vmem:[#allocation2 + $0xa0] sm:$0xff]   ;;  %v1138_v37 = vld [vmem:[#allocation2 + $0xe8] sm:$0xff]   ;;  %v1140_v38 = vld [vmem:[#allocation2 + $0x70] sm:$0xff]  }
  0x1c   :  { %v1141_v41 = vld [vmem:[#allocation2 + $0x30] sm:$0xff]   ;;  %v1139_v42 = vld [vmem:[#allocation2 + $0xa8] sm:$0xff]   ;;  %v1144_v44 = vld [vmem:[#allocation2 + $0x78] sm:$0xff]  }
  0x1d   :  { %1097 = vmatmul.mubr.msk.bf16.vlgmr.msra.gmra.mrb[0].mxu0 %vm76_vm2, %v63_v17  ;;  %v1142_v43 = vld [vmem:[#allocation2 + $0xf0] sm:$0xff]   ;;  %v1145_v46 = vld [vmem:[#allocation2 + $0x38] sm:$0xff]   ;;  %v126_v49 = vld [vmem:[%s1321_s1] sm:$0xff] }
  0x1e   :  { %1024 = vmatpush3.bf16.msra.mxu0 %v1119_v16  ;;  %1006 = vmatpush3.bf16.msra.mxu1 %v1125_v20  ;;  %v1143_v47 = vld [vmem:[#allocation2 + $0xb0] sm:$0xff]   ;;  %v1146_v48 = vld [vmem:[#allocation2 + $0xf8] sm:$0xff]   ;;  %v256_v50 = vcombine.high %v126_v49, %v126_v49  ;;  %v263_v51 = vrot.slane %v126_v49, %v1284_v45  ;;  %v1149_v52 = vld [vmem:[#allocation2 + $0x140] sm:$0xff]  }
  0x1f   :  { %1025 = vmatprep.subr.bf16.mxu0 %v1122_v18  ;;  %1007 = vmatprep.subr.bf16.mxu1 %v1128_v23  ;;  %v1147_v53 = vld [vmem:[#allocation2 + $0xb8] sm:$0xff]   ;;  %v1151_v57 = vld [vmem:[#allocation2 + $0x1c0] sm:$0xff]   ;;  %v1153_v62 = vld [vmem:[#allocation2 + $0x148] sm:$0xff]  }
  0x20   :  { %v271_v54 = vcombine.high %v263_v51, %v263_v51  ;;  %v279_v55 = vrot.slane %v263_v51, %v1284_v45  ;;  %v1292_v56 = vrot.slane %v256_v50, %v1284_v45  ;;  %v1150_v59 = vld [vmem:[#allocation2 + $0x100] sm:$0xff]   ;;  %v1155_v3 = vld [vmem:[#allocation2 + $0x1c8] sm:$0xff]   ;;  %v1157_v6 = vld [vmem:[#allocation2 + $0x150] sm:$0xff]  }
  0x21   :  { %v1152_v1 = vld [vmem:[#allocation2 + $0x180] sm:$0xff]   ;;  %v1154_v4 = vld [vmem:[#allocation2 + $0x108] sm:$0xff]   ;;  %v1159_v8 = vld [vmem:[#allocation2 + $0x1d0] sm:$0xff]  }
  0x22   :  { %1026 = vmatpush3.bf16.msra.mxu0 %v1123_v21  ;;  %1008 = vmatpush3.bf16.msra.mxu1 %v1129_v24  ;;  %v293_v58 = vrot.slane %v271_v54, %v1284_v45  ;;  %v272_v60 = vcombine.high %v1292_v56, %v1292_v56  ;;  %v301_v61 = vcombine.high %v279_v55, %v279_v55  ;;  %v1156_v7 = vld [vmem:[#allocation2 + $0x188] sm:$0xff]   ;;  %v1158_v9 = vld [vmem:[#allocation2 + $0x110] sm:$0xff]   ;;  %v1161_v10 = vld [vmem:[#allocation2 + $0x158] sm:$0xff]  }
  0x23   :  { %1027 = vmatprep.subr.bf16.mxu0 %v1126_v22  ;;  %1009 = vmatprep.subr.bf16.mxu1 %v1132_v27  ;;  %v1160_v11 = vld [vmem:[#allocation2 + $0x190] sm:$0xff]   ;;  %v1163_v12 = vld [vmem:[#allocation2 + $0x1d8] sm:$0xff]   ;;  %v1165_v14 = vld [vmem:[#allocation2 + $0x160] sm:$0xff]  }
  0x24   :  { %v303_v63 = vcombine.high %v293_v58, %v293_v58  ;;  %729 = vmatprep.mubr.bf16.mxu1 %v293_v58  ;;  %v300_v2 = vrot.slane %v272_v60, %v1284_v45  ;;  %v1162_v13 = vld [vmem:[#allocation2 + $0x118] sm:$0xff]   ;;  %v1167_v16 = vld [vmem:[#allocation2 + $0x1e0] sm:$0xff]   ;;  %v1169_v18 = vld [vmem:[#allocation2 + $0x168] sm:$0xff]  }
  0x25   :  { %v1164_v15 = vld [vmem:[#allocation2 + $0x198] sm:$0xff]   ;;  %v1166_v17 = vld [vmem:[#allocation2 + $0x120] sm:$0xff]   ;;  %v1171_v20 = vld [vmem:[#allocation2 + $0x1e8] sm:$0xff]  }
  0x26   :  { %1028 = vmatpush3.bf16.msra.mxu0 %v1127_v25  ;;  %1010 = vmatpush3.bf16.msra.mxu1 %v1133_v28  ;;  %v304_v5 = vcombine.high %v300_v2, %v300_v2  ;;  %v1168_v19 = vld [vmem:[#allocation2 + $0x1a0] sm:$0xff]   ;;  %v1170_v21 = vld [vmem:[#allocation2 + $0x128] sm:$0xff]   ;;  %v1173_v22 = vld [vmem:[#allocation2 + $0x170] sm:$0xff]  }
  0x27   :  { %1029 = vmatprep.subr.bf16.mxu0 %v1130_v26  ;;  %1011 = vmatprep.subr.bf16.mxu1 %v1136_v31  ;;  %v1172_v23 = vld [vmem:[#allocation2 + $0x1a8] sm:$0xff]   ;;  %v1175_v24 = vld [vmem:[#allocation2 + $0x1f0] sm:$0xff]   ;;  %v1177_v26 = vld [vmem:[#allocation2 + $0x178] sm:$0xff]  }
  0x28   :  { %769 = vmatprep.mubr.bf16.mxu0 %v303_v63  ;;  %v1174_v25 = vld [vmem:[#allocation2 + $0x130] sm:$0xff]   ;;  %v1179_v28 = vld [vmem:[#allocation2 + $0x1f8] sm:$0xff]   ;;  %v1181_v33 = vld [vmem:[%s1324_s4] sm:$0xff]  }
  0x29   :  { %v1176_v27 = vld [vmem:[#allocation2 + $0x1b0] sm:$0xff]   ;;  %v1180_v31 = vld [vmem:[#allocation2 + $0x1b8] sm:$0xff]   ;;  %v1182_v34 = vld [vmem:[%s1324_s4 + $0x8] sm:$0xff]  }
  0x2a   :  { %1030 = vmatpush3.bf16.msra.mxu0 %v1131_v29  ;;  %1012 = vmatpush3.bf16.msra.mxu1 %v1137_v35  ;;  %v1178_v29 = vld [vmem:[#allocation2 + $0x138] sm:$0xff]   ;;  %v926_v35 = vld [vmem:[%s1323_s3] ss:$0 sm:$0xff] }
  0x2b   :  { %1031 = vmatprep.subr.bf16.mxu0 %v1134_v30  ;;  %1013 = vmatprep.subr.bf16.mxu1 %v1140_v38  ;;  %v286_v30 = vrot.slane %v1292_v56, %v1284_v45 }
  0x2d   :  { %v302_v32 = vcombine.high %v286_v30, %v286_v30 }
  0x2e   :  { %1032 = vmatpush3.bf16.msra.mxu0 %v1135_v36  ;;  %1014 = vmatpush3.bf16.msra.mxu1 %v1141_v41 }
  0x2f   :  { %1033 = vmatprep.subr.bf16.mxu0 %v1138_v37  ;;  %1015 = vmatprep.subr.bf16.mxu1 %v1144_v44 }
  0x32   :  { %1034 = vmatpush3.bf16.msra.mxu0 %v1139_v42  ;;  %1016 = vmatpush3.bf16.msra.mxu1 %v1145_v46 }
  0x33   :  { %1035 = vmatprep.subr.bf16.mxu0 %v1142_v43  ;;  %1045 = vmatprep.subr.bf16.mxu1 %v1149_v52 }
  0x35   :  { %730 = vmatmul.mubr.bf16.vlgmr.msra.gmra.mrb[0].mxu1 %v279_v55 }
  0x36   :  { %1036 = vmatpush3.bf16.msra.mxu0 %v1143_v47  ;;  %1046 = vmatpush3.bf16.msra.mxu1 %v1150_v59 }
  0x37   :  { %1037 = vmatprep.subr.bf16.mxu0 %v1146_v48  ;;  %1047 = vmatprep.subr.bf16.mxu1 %v1153_v62 }
  0x38   :  { %809 = vmatprep.mubr.bf16.mxu1 %v300_v2 }
  0x3a   :  { %1038 = vmatpush3.bf16.msra.mxu0 %v1147_v53  ;;  %1048 = vmatpush3.bf16.msra.mxu1 %v1154_v4 }
  0x3b   :  { %1067 = vmatprep.subr.bf16.mxu0 %v1151_v57  ;;  %1049 = vmatprep.subr.bf16.mxu1 %v1157_v6 }
  0x3d   :  { %770 = vmatmul.mubr.bf16.vlgmr.msra.gmra.mrb[4].mxu0 %v301_v61 }
  0x3e   :  { %1068 = vmatpush3.bf16.msra.mxu0 %v1152_v1  ;;  %849 = vmatprep.mubr.bf16.mxu0 %v304_v5 }
  0x3f   :  { %1069 = vmatprep.subr.bf16.mxu0 %v1155_v3  ;;  %1050 = vmatpush3.bf16.msra.mxu1 %v1158_v9  ;;  %v997_v3 = vld [vmem:[%s1326_s6] ss:$0 sm:$0xff] }
  0x40   :  { %1051 = vmatprep.subr.bf16.mxu1 %v1161_v10 }
  0x42   :  { %1070 = vmatpush3.bf16.msra.mxu0 %v1156_v7 }
  0x43   :  { %1071 = vmatprep.subr.bf16.mxu0 %v1159_v8  ;;  %1052 = vmatpush3.bf16.msra.mxu1 %v1162_v13 }
  0x44   :  { %1053 = vmatprep.subr.bf16.mxu1 %v1165_v14 }
  0x46   :  { %1072 = vmatpush3.bf16.msra.mxu0 %v1160_v11 }
  0x47   :  { %1073 = vmatprep.subr.bf16.mxu0 %v1163_v12  ;;  %1054 = vmatpush3.bf16.msra.mxu1 %v1166_v17 }
  0x48   :  { %1055 = vmatprep.subr.bf16.mxu1 %v1169_v18 }
  0x4a   :  { %1074 = vmatpush3.bf16.msra.mxu0 %v1164_v15 }
  0x4b   :  { %1075 = vmatprep.subr.bf16.mxu0 %v1167_v16  ;;  %1056 = vmatpush3.bf16.msra.mxu1 %v1170_v21 }
  0x4c   :  { %1057 = vmatprep.subr.bf16.mxu1 %v1173_v22 }
  0x4e   :  { %1076 = vmatpush3.bf16.msra.mxu0 %v1168_v19 }
  0x4f   :  { %1077 = vmatprep.subr.bf16.mxu0 %v1171_v20  ;;  %1058 = vmatpush3.bf16.msra.mxu1 %v1174_v25 }
  0x50   :  { %1059 = vmatprep.subr.bf16.mxu1 %v1177_v26 }
  0x52   :  { %1078 = vmatpush3.bf16.msra.mxu0 %v1172_v23 }
  0x53   :  { %1079 = vmatprep.subr.bf16.mxu0 %v1175_v24  ;;  %1060 = vmatpush3.bf16.msra.mxu1 %v1178_v29 }
  0x54   :  { %1100 = vmatprep.subr.bf16.mxu1 %v1212_v0 }
  0x56   :  { %1080 = vmatpush3.bf16.msra.mxu0 %v1176_v27  ;;  %810 = vmatmul.mubr.bf16.vlgmr.msra.gmra.mrb[4].mxu1 %v286_v30 }
  0x57   :  { %1081 = vmatprep.subr.bf16.mxu0 %v1179_v28  ;;  %1104 = vmatprep.mubr.msk.bf16.mxu1 %vm1213_vm0, %v1212_v0 }
  0x58   :  { %1101 = vmatpush3.bf16.msra.mxu1 %v1181_v33 }
  0x59   :  { %1102 = vmatprep.subr.bf16.mxu1 %v1212_v0 }
  0x5a   :  { %1082 = vmatpush3.bf16.msra.mxu0 %v1180_v31 }
  0x5c   :  { %1103 = vmatpush3.bf16.msra.mxu1 %v1182_v34 }
  0x5d   :  { %850 = vmatmul.mubr.bf16.vlgmr.msra.gmra.mrb[8].mxu0 %v302_v32 }
  0xf0   :  { %v114_v36 = vpop.f32.mrb[0].mxu0 }
  0xf1   :  { %v115_v37 = vadd.f32 %v926_v35, %v114_v36  ;;  %v1098_v38 = vpop.f32.mrb[1].mxu0 }
  0xf2   :  { %v117_v39 = vpop.f32.mrb[2].mxu0 }
  0xf3   :  { %1183 = vtanh.f32 %v115_v37  ;;  %v1099_v40 = vpop.f32.mrb[3].mxu0 }
  0xfd   :  { %v1184_v41 = vpop.eup %1183 }
  0xfe   :  { %v121_v42 = vpack.c.bf16 %v1184_v41, %v1184_v41 }
 0x100   :  { %1105 = vmatmul.mubr.msk.bf16.vlgmr.msra.gmra.mrb[8].mxu1 %vm76_vm2, %v121_v42 }
 0x108   :  { %v1017_v0 = vpop.f32.mrb[0].mxu1 }
 0x109   :  { %v1018_v43 = vpop.f32.mrb[1].mxu1 }
 0x10a   :  { %v1019_v44 = vadd.f32 %v1018_v43, %v1017_v0  ;;  %v1020_v45 = vpop.f32.mrb[2].mxu1 }
 0x10b   :  { %v1021_v47 = vpop.f32.mrb[3].mxu1 }
 0x110   :  { %v1039_v46 = vpop.f32.mrb[4].mxu0 }
 0x111   :  { %v1040_v48 = vpop.f32.mrb[5].mxu0 }
 0x112   :  { %v1041_v49 = vadd.f32 %v1040_v48, %v1039_v46  ;;  %v1042_v50 = vpop.f32.mrb[6].mxu0 }
 0x113   :  { %v1043_v51 = vpop.f32.mrb[7].mxu0 }
 0x114   :  { %v772_v52 = vadd.f32 %v1041_v49, %v1019_v44 }
 0x129   :  { %v1061_v53 = vpop.f32.mrb[4].mxu1 }
 0x12a   :  { %v1062_v54 = vpop.f32.mrb[5].mxu1 }
 0x12b   :  { %v1063_v55 = vadd.f32 %v1062_v54, %v1061_v53  ;;  %v1064_v57 = vpop.f32.mrb[6].mxu1 }
 0x12c   :  { %v1065_v59 = vpop.f32.mrb[7].mxu1 }
 0x12d   :  { %v812_v60 = vadd.f32 %v1063_v55, %v772_v52 }
 0x130   :  { %v1083_v56 = vpop.f32.mrb[8].mxu0 }
 0x131   :  { %v1084_v58 = vpop.f32.mrb[9].mxu0 }
 0x132   :  { %v1085_v61 = vadd.f32 %v1084_v58, %v1083_v56  ;;  %v1086_v62 = vpop.f32.mrb[10].mxu0 }
 0x133   :  { %v1087_v63 = vpop.f32.mrb[11].mxu0 }
 0x134   :  { %v852_v1 = vadd.f32 %v1085_v61, %v812_v60 }
 0x1d3   :  { %v906_v2 = vpop.f32.mrb[8].mxu1 }
 0x1d4   :  { %v907_v4 = vadd.f32 %v906_v2, %v852_v1  ;;  %v1106_v5 = vpop.f32.mrb[9].mxu1 }
 0x1d5   :  { %v909_v6 = vpop.f32.mrb[10].mxu1 }
 0x1d6   :  { %v919_v7 = vadd.f32 %v997_v3, %v907_v4  ;;  %v1107_v8 = vpop.f32.mrb[11].mxu1 }
 0x1d8   :  { %920 = vst [vmem:[%s1327_s7] sm:$0x3] %v919_v7 }
 0x1d9   :  { %925 = vsyncpa [#allocation3], 1 }

</bundles_post_ra>
